<compile_context>
chip_gen: v6e
topology: v6e:2x2x1
jax: 0.10.0
libtpu: 0.0.40
codegen_flags: <defaults>
</compile_context>

<pallas_src>
import functools

import jax
import jax.numpy as jnp
from jax.experimental import pallas as pl
from jax.experimental.pallas import tpu as pltpu


_MXU_DTYPE = jnp.bfloat16          # MXU inputs; accumulation stays f32
_PALLAS_MM_MIN_FLOPS = 2e6         # below this, padded MXU tiles are pure overhead


def _round_up(x, m):
    return (x + m - 1) // m * m


@functools.lru_cache(maxsize=None)
def _vmem_budget_bytes():
    """Generation-aware scoped-VMEM budget (v5e/v6e: ~100 MiB, v7x: ~48 MiB)."""
    cap = None
    try:
        info = pltpu.get_tpu_info()
        cap = int(getattr(info, "vmem_capacity_bytes", 0)) or None
    except Exception:
        cap = None
    if cap is None:
        cap = 64 * 1024 * 1024     # conservative fallback == v7x per-core VMEM
    return int(min(max(cap - (16 << 20), 32 << 20), 100 << 20))


# ----------------------------------------------------------------------------
# Pallas tiled matmul (large 1x1 convs / linears; tiny ones -> jnp.dot)
# ----------------------------------------------------------------------------

def _mm_kernel_single_k(a_ref, b_ref, o_ref):
    o_ref[...] = jnp.dot(a_ref[...], b_ref[...],
                         preferred_element_type=jnp.float32).astype(o_ref.dtype)


def _mm_kernel_multi_k(a_ref, b_ref, o_ref, acc_ref):
    @pl.when(pl.program_id(2) == 0)
    def _():
        acc_ref[...] = jnp.zeros_like(acc_ref)

    acc_ref[...] += jnp.dot(a_ref[...], b_ref[...],
                            preferred_element_type=jnp.float32)

    @pl.when(pl.program_id(2) == pl.num_programs(2) - 1)
    def _():
        o_ref[...] = acc_ref[...].astype(o_ref.dtype)


def _pick_mm_dim(dim, cap, align):
    """Return (tile, padded_dim).  Prefer the full dim or an aligned divisor so
    no jnp.pad copy of the operand is needed; pad only as a last resort."""
    if dim <= cap:
        return dim, dim
    for t in range(cap, align - 1, -1):
        if t % align == 0 and dim % t == 0:
            return t, dim
    return cap, _round_up(dim, cap)


def matmul(a, b):
    """a @ b in f32.  Pallas/MXU for large problems, jnp.dot for tiny ones."""
    M, K = a.shape
    K2, N = b.shape
    assert K == K2
    if 2.0 * M * N * K < _PALLAS_MM_MIN_FLOPS or min(M, N, K) < 8:
        return jnp.dot(a.astype(jnp.float32), b.astype(jnp.float32))

    a = a.astype(_MXU_DTYPE)
    b = b.astype(_MXU_DTYPE)
    TM, Mp = _pick_mm_dim(M, 512, 8)
    TN, Np = _pick_mm_dim(N, 256, 128)
    TK, Kp = _pick_mm_dim(K, 1024 if K <= 1024 else 512, 128)
    if Mp != M or Kp != K:
        a = jnp.pad(a, ((0, Mp - M), (0, Kp - K)))
    if Kp != K or Np != N:
        b = jnp.pad(b, ((0, Kp - K), (0, Np - N)))
    gm, gn, gk = Mp // TM, Np // TN, Kp // TK
    vmem_limit = min(_vmem_budget_bytes(), 64 * 1024 * 1024)

    if gk == 1:
        out = pl.pallas_call(
            _mm_kernel_single_k,
            out_shape=jax.ShapeDtypeStruct((Mp, Np), jnp.float32),
            grid_spec=pltpu.PrefetchScalarGridSpec(
                num_scalar_prefetch=0,
                grid=(gm, gn),
                in_specs=[pl.BlockSpec((TM, TK), lambda i, j: (i, 0)),
                          pl.BlockSpec((TK, TN), lambda i, j: (0, j))],
                out_specs=pl.BlockSpec((TM, TN), lambda i, j: (i, j))),
            compiler_params=pltpu.CompilerParams(
                dimension_semantics=("parallel", "parallel"),
                vmem_limit_bytes=vmem_limit),
        )(a, b)
    else:
        out = pl.pallas_call(
            _mm_kernel_multi_k,
            out_shape=jax.ShapeDtypeStruct((Mp, Np), jnp.float32),
            grid_spec=pltpu.PrefetchScalarGridSpec(
                num_scalar_prefetch=0,
                grid=(gm, gn, gk),
                in_specs=[pl.BlockSpec((TM, TK), lambda i, j, k: (i, k)),
                          pl.BlockSpec((TK, TN), lambda i, j, k: (k, j))],
                out_specs=pl.BlockSpec((TM, TN), lambda i, j, k: (i, j)),
                scratch_shapes=[pltpu.VMEM((TM, TN), jnp.float32)]),
            compiler_params=pltpu.CompilerParams(
                dimension_semantics=("parallel", "parallel", "arbitrary"),
                vmem_limit_bytes=vmem_limit),
        )(a, b)

    if Mp != M or Np != N:
        out = out[:M, :N]
    return out


# ----------------------------------------------------------------------------
# Fused 3x3 conv kernel (in-VMEM im2col, Cout-tiled, bias + BN-stats epilogue)
# ----------------------------------------------------------------------------

def _conv3x3_kernel(x_ref, w_ref, b_ref, y_ref, stats_ref):
    # x_ref:     (H+2, W+2, Cin)   zero-padded, already-activated input (bf16)
    # w_ref:     (3, 3*Cin, TCout) per-kh, kw-concatenated conv weights (bf16)
    # b_ref:     (1, TCout)        conv bias (f32)
    # y_ref:     (TR, W, TCout)    output row/cout tile (bf16 or f32)
    # stats_ref: (2, TCout)        row 0 = per-channel sum, row 1 = sum of squares
    TR, W, TCO = y_ref.shape
    cin = x_ref.shape[-1]
    row0 = pl.multiple_of(pl.program_id(2) * TR, TR)

    acc = jnp.zeros((TR * W, TCO), jnp.float32)
    for kh in range(3):
        # Three column-shifted slabs, lane-concatenated -> one K=3*Cin matmul
        # per kernel row (3 accumulator updates instead of 9, 3x K occupancy).
        parts = [
            x_ref[pl.ds(row0 + kh, TR), pl.ds(kw, W), :].reshape(TR * W, cin)
            for kw in range(3)
        ]
        cat = jnp.concatenate(parts, axis=-1)                      # (TR*W, 3Cin)
        acc = acc + jnp.dot(cat, w_ref[kh],
                            preferred_element_type=jnp.float32)

    y = acc + b_ref[...]                                           # (+ conv bias)
    y_ref[...] = y.reshape(TR, W, TCO).astype(y_ref.dtype)
    # BatchNorm-stats epilogue in f32 (no second HBM pass over the output).
    stats_ref[0:1, :] = jnp.sum(y, axis=0, keepdims=True)
    stats_ref[1:2, :] = jnp.sum(y * y, axis=0, keepdims=True)


def _conv3x3_reference(xpad, w3, b2):
    """Plain-JAX reference / fallback (same math, same bf16 inputs)."""
    N, Hp2, Wp2, Cin = xpad.shape
    H, W = Hp2 - 2, Wp2 - 2
    Cout = w3.shape[-1]
    xf = xpad.astype(jnp.float32)
    out = jnp.zeros((N, H, W, Cout), jnp.float32)
    for kh in range(3):
        for kw in range(3):
            wk = w3[kh, kw * Cin:(kw + 1) * Cin, :].astype(jnp.float32)
            out = out + jnp.einsum("nhwc,cd->nhwd",
                                   xf[:, kh:kh + H, kw:kw + W, :], wk)
    return out + b2[0].astype(jnp.float32)


def _pick_conv_tiles(H, W, Cin, Cout, out_bytes, budget):
    """Choose (row tile, Cout tile) so the per-step VMEM footprint fits the
    generation-aware budget.  Returns None if no feasible tiling exists."""
    usable = int(budget * 0.85)
    img = 2 * (H + 2) * (W + 2) * Cin * 2          # double-buffered bf16 image
    if img > usable:
        return None

    # ---- Cout tile: full when small; else a divisor that is a multiple of 128
    # (BlockSpec lane constraint), preferring MXU-sized (<=512) tiles.
    if Cout <= 256:
        tco_cands = [Cout]
    else:
        divs = [d for d in range(Cout, 0, -1)
                if Cout % d == 0 and (d == Cout or d % 128 == 0)]
        tco_cands = sorted([d for d in divs if d <= 512], reverse=True) + \
                    sorted([d for d in divs if d > 512])
    tco = None
    for c in tco_cands:
        if img + 2 * 9 * Cin * c * 2 <= usable:
            tco = c
            break
    if tco is None:
        return None

    fixed = img + 2 * 9 * Cin * tco * 2 + 2 * 3 * tco * 4 + (1 << 20)
    per_row = W * (2 * tco * out_bytes        # double-buffered output tile
                   + 4 * tco                  # f32 accumulator
                   + 2 * 3 * Cin              # (TR*W, 3*Cin) bf16 concat buffer
                   + 2 * 3 * Cin)             # slice temporaries
    fit = [tr for tr in range(H, 0, -1)
           if H % tr == 0 and fixed + tr * per_row <= usable]
    if not fit:
        return None
    multi = [tr for tr in fit if H // tr >= 2]    # keep >=2 row tiles if possible
    return (multi[0] if multi else fit[0]), tco


def conv3x3_nhwc(x, w_oihw, bias, out_dtype=jnp.bfloat16):
    """PyTorch Conv2d(kernel=3, stride=1, pad=1) on NHWC activations.

    Returns (y, chan_sum, chan_sumsq): conv output (out_dtype) plus fused
    per-channel f32 sum / sum-of-squares (BatchNorm-stats epilogue).
    """
    N, H, W, Cin = x.shape
    Cout = w_oihw.shape[0]
    # (O,I,KH,KW) -> (KH, KW*Cin, O): K index = kw*Cin + cin (matches the
    # in-kernel lane-concatenation order).
    w3 = jnp.transpose(w_oihw, (2, 3, 1, 0)).reshape(3, 3 * Cin, Cout).astype(_MXU_DTYPE)
    b2 = bias.astype(jnp.float32).reshape(1, Cout)
    xpad = jnp.pad(x.astype(_MXU_DTYPE), ((0, 0), (1, 1), (1, 1), (0, 0)))

    budget = _vmem_budget_bytes()
    out_bytes = jnp.dtype(out_dtype).itemsize
    tiles = None
    if W % 16 == 0:   # bf16 sublane pack: needed for the (TR, W)->(TR*W) merge
        tiles = _pick_conv_tiles(H, W, Cin, Cout, out_bytes, budget)
    if tiles is None:
        # TODO(synk): shapes that do not fit the VMEM budget (or W % 16 != 0)
        # take the plain-JAX reference path.
        y = _conv3x3_reference(xpad, w3, b2)
        return (y.astype(out_dtype),
                jnp.sum(y, axis=(0, 1, 2)), jnp.sum(y * y, axis=(0, 1, 2)))

    TR, TCO = tiles
    NT, NCO = H // TR, Cout // TCO
    y, stats = pl.pallas_call(
        _conv3x3_kernel,
        out_shape=(jax.ShapeDtypeStruct((N, H, W, Cout), out_dtype),
                   jax.ShapeDtypeStruct((N * NT, 2, Cout), jnp.float32)),
        grid_spec=pltpu.PrefetchScalarGridSpec(
            num_scalar_prefetch=0,
            grid=(N, NCO, NT),
            in_specs=[
                # whole padded image per sample: re-DMA'd only when b changes
                pl.BlockSpec((None, H + 2, W + 2, Cin),
                             lambda b, co, j: (b, 0, 0, 0)),
                # Cout-tiled weights: re-DMA'd only when co changes
                pl.BlockSpec((3, 3 * Cin, TCO), lambda b, co, j: (0, 0, co)),
                pl.BlockSpec((1, TCO), lambda b, co, j: (0, co)),
            ],
            out_specs=(
                pl.BlockSpec((None, TR, W, TCO), lambda b, co, j: (b, j, 0, co)),
                pl.BlockSpec((None, 2, TCO),
                             lambda b, co, j: (b * NT + j, 0, co)),
            )),
        compiler_params=pltpu.CompilerParams(
            dimension_semantics=("parallel", "parallel", "parallel"),
            vmem_limit_bytes=budget),
    )(xpad, w3, b2)
    return y, jnp.sum(stats[:, 0, :], axis=0), jnp.sum(stats[:, 1, :], axis=0)


# ----------------------------------------------------------------------------
# GBlock forward (spectral norm, conditional BN, skip) -- glue in plain JAX
# ----------------------------------------------------------------------------

def l2normalize(v, eps=1e-4):
    return v / (jnp.linalg.norm(v) + eps)


def spectral_norm_weight(w_bar, u):
    """One power iteration (SpectralNorm._update_u_v), returning weight/sigma."""
    h = w_bar.shape[0]
    w2 = w_bar.reshape(h, -1)
    v = l2normalize(w2.T @ u)
    u_new = l2normalize(w2 @ v)
    sigma = jnp.dot(u_new, w2 @ v)
    return w_bar / sigma


def _upsample2x(x):                      # F.interpolate(scale_factor=2), nearest
    return jnp.repeat(jnp.repeat(x, 2, axis=1), 2, axis=2)


def _cond_scale_bias(condition, mean, inv_std, p, tag):
    """ConditionalBatchNorm2d folded into a per-(sample, channel) scale/bias."""
    wg = spectral_norm_weight(p[tag + "_gamma_w_bar"], p[tag + "_gamma_u"])
    wb = spectral_norm_weight(p[tag + "_beta_w_bar"], p[tag + "_beta_u"])
    gamma = matmul(condition, wg.T) + 1.0          # (B, C)  (tiny -> jnp.dot)
    beta = matmul(condition, wb.T)                 # (B, C)
    scale = gamma * inv_std[None, :]
    bias = beta - gamma * (mean * inv_std)[None, :]
    return scale, bias


def gblock_forward(params, x_nchw, condition, eps=1e-4):
    """GBlock(in_ch, out_ch, upsample=True, bn=True, conditional=True).forward."""
    x = jnp.transpose(x_nchw, (0, 2, 3, 1)).astype(jnp.float32)   # NHWC
    B, H, W, Cin = x.shape

    # HyperBN (training-mode batch stats, biased variance, eps=1e-4).
    mean0 = jnp.mean(x, axis=(0, 1, 2))
    var0 = jnp.mean(jnp.square(x - mean0), axis=(0, 1, 2))
    inv0 = jax.lax.rsqrt(var0 + eps)
    scale0, bias0 = _cond_scale_bias(condition, mean0, inv0, params, "bn0")

    # BN-apply + ReLU + nearest 2x upsample (pad + bf16 cast happen inside the
    # conv wrapper): one fused XLA elementwise producer of the conv0 input.
    h = jnp.maximum(x * scale0[:, None, None, :] + bias0[:, None, None, :], 0.0)
    hu = _upsample2x(h)                                           # (B, 2H, 2W, Cin)

    # conv0: fused Pallas 3x3 conv with BN-stats epilogue, bf16 output.
    w0 = spectral_norm_weight(params["conv0_w_bar"], params["conv0_u"])
    y0, s0, sq0 = conv3x3_nhwc(hu, w0, params["conv0_b"], out_dtype=jnp.bfloat16)
    cnt = y0.shape[0] * y0.shape[1] * y0.shape[2]
    # NOTE: E[y^2]-E[y]^2 in f32 (from the f32 accumulator); adequate for fwd.
    mean1 = s0 / cnt
    var1 = jnp.maximum(sq0 / cnt - mean1 * mean1, 0.0)
    inv1 = jax.lax.rsqrt(var1 + eps)
    scale1, bias1 = _cond_scale_bias(condition, mean1, inv1, params, "bn1")

    # HyperBN_1 apply + ReLU (fused by XLA with conv1's pad + bf16 cast).
    h1 = jnp.maximum(y0.astype(jnp.float32) * scale1[:, None, None, :]
                     + bias1[:, None, None, :], 0.0)

    # conv1: fused Pallas 3x3 conv, bf16 output.
    w1 = spectral_norm_weight(params["conv1_w_bar"], params["conv1_u"])
    y1, _, _ = conv3x3_nhwc(h1, w1, params["conv1_b"], out_dtype=jnp.bfloat16)

    # Skip: conv_sc(upsample(x)) == upsample(conv_sc(x)) for a 1x1 conv with
    # nearest upsample -> do the matmul at the small resolution.
    Cout = y1.shape[-1]
    wsc = spectral_norm_weight(params["sc_w_bar"], params["sc_u"]).reshape(Cout, Cin)
    skip = matmul(x.reshape(B * H * W, Cin), wsc.T) + params["sc_b"][None, :]
    skip = _upsample2x(skip.reshape(B, H, W, Cout))

    out = y1.astype(jnp.float32) + skip   # fused by XLA with the final transpose
    return jnp.transpose(out, (0, 3, 1, 2))                       # back to NCHW


# ----------------------------------------------------------------------------
# Deterministic parameters (shapes from GBlock.__init__, z_dim=148 default)
# ----------------------------------------------------------------------------

def init_params(key, in_channel, out_channel, z_dim=148):
    keys = iter(jax.random.split(key, 32))
    nk = lambda: next(keys)
    w = lambda shape, s=0.05: jax.random.normal(nk(), shape, jnp.float32) * s
    p = {}
    for tag, c in (("bn0", in_channel), ("bn1", out_channel)):
        p[tag + "_gamma_w_bar"] = w((c, z_dim))
        p[tag + "_gamma_u"] = jax.random.normal(nk(), (c,), jnp.float32)
        p[tag + "_beta_w_bar"] = w((c, z_dim))
        p[tag + "_beta_u"] = jax.random.normal(nk(), (c,), jnp.float32)
    p["conv0_w_bar"] = w((out_channel, in_channel, 3, 3))
    p["conv0_u"] = jax.random.normal(nk(), (out_channel,), jnp.float32)
    p["conv0_b"] = w((out_channel,))
    p["conv1_w_bar"] = w((out_channel, out_channel, 3, 3))
    p["conv1_u"] = jax.random.normal(nk(), (out_channel,), jnp.float32)
    p["conv1_b"] = w((out_channel,))
    p["sc_w_bar"] = w((out_channel, in_channel, 1, 1))
    p["sc_u"] = jax.random.normal(nk(), (out_channel,), jnp.float32)
    p["sc_b"] = w((out_channel,))
    return p


if __name__ == "__main__":
    B, CIN, COUT, H, W, Z_DIM = 2, 16, 16, 16, 16, 148
    key = jax.random.PRNGKey(0)
    kp, kx, kc, k1, k2, k3, k4, k5 = jax.random.split(key, 8)

    # --- self-test: Pallas matmul (single-K path) vs jnp.dot on bf16 inputs ---
    a = jax.random.normal(k1, (384, 272), jnp.float32)
    b = jax.random.normal(k2, (272, 256), jnp.float32)
    got = matmul(a, b)
    ref = jnp.dot(a.astype(jnp.bfloat16).astype(jnp.float32),
                  b.astype(jnp.bfloat16).astype(jnp.float32))
    err = jnp.max(jnp.abs(got - ref)) / (jnp.max(jnp.abs(ref)) + 1e-6)
    assert float(err) < 2e-2, f"matmul single-K mismatch: {float(err)}"

    # --- self-test: Pallas matmul (multi-K path, gated store) ---
    a = jax.random.normal(k3, (256, 1536), jnp.float32)
    b = jax.random.normal(k4, (1536, 192), jnp.float32)
    got = matmul(a, b)
    ref = jnp.dot(a.astype(jnp.bfloat16).astype(jnp.float32),
                  b.astype(jnp.bfloat16).astype(jnp.float32))
    err = jnp.max(jnp.abs(got - ref)) / (jnp.max(jnp.abs(ref)) + 1e-6)
    assert float(err) < 2e-2, f"matmul multi-K mismatch: {float(err)}"

    # --- self-test: fused 3x3 conv kernel vs plain-JAX reference ---
    xt = jax.random.normal(k5, (2, 12, 16, 8), jnp.float32)
    wt = jax.random.normal(k1, (8, 8, 3, 3), jnp.float32) * 0.1
    bt = jax.random.normal(k2, (8,), jnp.float32) * 0.1
    yt, st, sqt = conv3x3_nhwc(xt, wt, bt, out_dtype=jnp.float32)
    xtp = jnp.pad(xt.astype(jnp.bfloat16), ((0, 0), (1, 1), (1, 1), (0, 0)))
    w3t = jnp.transpose(wt, (2, 3, 1, 0)).reshape(3, 24, 8).astype(jnp.bfloat16)
    yref = _conv3x3_reference(xtp, w3t, bt.astype(jnp.float32).reshape(1, 8))
    err = jnp.max(jnp.abs(yt - yref)) / (jnp.max(jnp.abs(yref)) + 1e-6)
    assert float(err) < 2e-2, f"conv3x3 mismatch: {float(err)}"
    serr = jnp.max(jnp.abs(st - jnp.sum(yt, axis=(0, 1, 2)))) / (
        jnp.max(jnp.abs(jnp.sum(yt, axis=(0, 1, 2)))) + 1e-3)
    assert float(serr) < 1e-3, f"conv3x3 stats epilogue mismatch: {float(serr)}"

    # --- GBlock forward ---
    params = init_params(kp, CIN, COUT, Z_DIM)
    x = jax.random.normal(kx, (B, CIN, H, W), jnp.float32)
    cond = jax.random.normal(kc, (B, Z_DIM), jnp.float32)
    fwd = jax.jit(gblock_forward)
    out = fwd(params, x, cond)
    jax.block_until_ready(out)
    assert out.shape == (B, COUT, 2 * H, 2 * W), out.shape
    assert bool(jnp.all(jnp.isfinite(out)))
    print("KERNEL_OK")
</pallas_src>

<mosaic_0001>
module attributes {stable_mosaic.version = 11 : i64} {
  func.func @_mm_kernel_single_k(%arg0: i32, %arg1: i32, %arg2: memref<384x272xbf16, #tpu.memory_space<vmem>>, %arg3: memref<272x256xbf16, #tpu.memory_space<vmem>>, %arg4: memref<384x256xf32, #tpu.memory_space<vmem>>) attributes {dimension_semantics = [#tpu.dimension_semantics<parallel>, #tpu.dimension_semantics<parallel>], iteration_bounds = array<i64: 1, 1>, scalar_prefetch = 0 : i64, scratch_operands = 0 : i64, tpu.core_type = #tpu.core_type<tc>, window_params = [{transform_indices = @transform_0, window_bounds = array<i64: 384, 272>}, {transform_indices = @transform_1, window_bounds = array<i64: 272, 256>}, {transform_indices = @transform_2, window_bounds = array<i64: 384, 256>}]} {
    %c0 = arith.constant 0 : index
    %c0_0 = arith.constant 0 : index
    %0 = vector.load %arg2[%c0, %c0_0] : memref<384x272xbf16, #tpu.memory_space<vmem>>, vector<384x272xbf16>
    %c0_1 = arith.constant 0 : index
    %c0_2 = arith.constant 0 : index
    %1 = vector.load %arg3[%c0_1, %c0_2] : memref<272x256xbf16, #tpu.memory_space<vmem>>, vector<272x256xbf16>
    %cst = arith.constant dense<0.000000e+00> : vector<384x256xf32>
    %2 = tpu.matmul %0, %1, %cst {dimension_numbers = #tpu.dot_dimension_numbers<[1], [0], [0], [1], [0, 0, 1, 1], [], []>} : vector<384x272xbf16>, vector<272x256xbf16>, vector<384x256xf32> -> vector<384x256xf32>
    %c0_3 = arith.constant 0 : index
    %c0_4 = arith.constant 0 : index
    %3 = vector.load %arg4[%c0_3, %c0_4] : memref<384x256xf32, #tpu.memory_space<vmem>>, vector<384x256xf32>
    tpu.vector_store %arg4[%c0_3, %c0_4], %2 {strides = array<i32>} : memref<384x256xf32, #tpu.memory_space<vmem>>, vector<384x256xf32>,
    return
  }
  func.func @transform_0(%arg0: i32, %arg1: i32) -> (i32, i32) {
    %c0_i32 = arith.constant 0 : i32
    %c0_i32_0 = arith.constant 0 : i32
    return %arg0, %c0_i32 : i32, i32
  }
  func.func @transform_1(%arg0: i32, %arg1: i32) -> (i32, i32) {
    %c0_i32 = arith.constant 0 : i32
    %c0_i32_0 = arith.constant 0 : i32
    return %c0_i32, %arg1 : i32, i32
  }
  func.func @transform_2(%arg0: i32, %arg1: i32) -> (i32, i32) {
    %c0_i32 = arith.constant 0 : i32
    return %arg0, %arg1 : i32, i32
  }
}

</mosaic_0001>

<bundles_post_ra>
// kernel: tpu_custom_call.1
= control target key start
LH: loop header
LB: loop body
LE: loop exit
PB: predicated region body
PF: predicated region fallthrough
CT: control target
= control target key end

     0   :  { %v1707_v2 = vmov 0   ;;  %vm673_vm0 = vcmask 130048   ;;  %s2290_s0 = inlined_call_operand.vmem [shape: bf16[384,272], index: 0, kind: input, shape index: {}]   ;;  %s2291_s1 = inlined_call_operand.vmem [shape: bf16[272,256], index: 1, kind: input, shape index: {}]   ;;  %s2292_s2 = inlined_call_operand.hbm [shape: f32[384,256], index: 2, kind: output, shape index: {}]  }
   0x1   :  { %v1538_v0 = vld [vmem:[%s2291_s1 + $0x74] ss:$8 sps:$4 sm:$0xff]   ;;  %v1540_v1 = vld [vmem:[%s2291_s1 + $0x70] ss:$8 sps:$4 sm:$0xff]   ;;  %1051 = vmatprep.mubr.bf16.mxu1 %v1707_v2  ;;  %v1541_v3 = vld [vmem:[%s2291_s1 + $0x64] ss:$8 sps:$4 sm:$0xff]  }
   0x2   :  { %746 = vmatprep.subr.bf16.mxu0 %v1538_v0  ;;  %v1543_v4 = vld [vmem:[%s2291_s1 + $0x60] ss:$8 sps:$4 sm:$0xff]   ;;  %v1544_v5 = vld [vmem:[%s2291_s1 + $0x54] ss:$8 sps:$4 sm:$0xff]   ;;  %v1546_v6 = vld [vmem:[%s2291_s1 + $0x50] ss:$8 sps:$4 sm:$0xff]  }
   0x3   :  { %747 = vmatpush1.bf16.msra.mxu0 %v1540_v1  ;;  %v1547_v7 = vld [vmem:[%s2291_s1 + $0x44] ss:$8 sps:$4 sm:$0xff]   ;;  %v1549_v8 = vld [vmem:[%s2291_s1 + $0x40] ss:$8 sps:$4 sm:$0xff]   ;;  %v1550_v9 = vld [vmem:[%s2291_s1 + $0x34] ss:$8 sps:$4 sm:$0xff]  }
   0x4   :  { %748 = vmatprep.subr.bf16.mxu0 %v1541_v3  ;;  %v1552_v10 = vld [vmem:[%s2291_s1 + $0x30] ss:$8 sps:$4 sm:$0xff]   ;;  %v1553_v11 = vld [vmem:[%s2291_s1 + $0x24] ss:$8 sps:$4 sm:$0xff]   ;;  %v1555_v12 = vld [vmem:[%s2291_s1 + $0x20] ss:$8 sps:$4 sm:$0xff]  }
   0x5   :  { %v1580_v13 = vld [vmem:[%s2291_s1 + $0x104] ss:$8 sps:$4 sm:$0xff]   ;;  %v1582_v14 = vld [vmem:[%s2291_s1 + $0x100] ss:$8 sps:$4 sm:$0xff]   ;;  %v1556_v15 = vld [vmem:[%s2291_s1 + $0x14] ss:$8 sps:$4 sm:$0xff]  }
   0x6   :  { %1033 = vmatprep.subr.bf16.mxu1 %v1580_v13  ;;  %v1586_v16 = vld [vmem:[%s2290_s0 + $0x8] ss:$12 sps:$4 sm:$0xff]   ;;  %v1558_v17 = vld [vmem:[%s2291_s1 + $0x10] ss:$8 sps:$4 sm:$0xff]   ;;  %v1559_v18 = vld [vmem:[%s2291_s1 + $0x4] ss:$8 sps:$4 sm:$0xff]  }
   0x7   :  { %749 = vmatpush1.bf16.msra.mxu0 %v1543_v4  ;;  %1034 = vmatpush1.bf16.msra.mxu1 %v1582_v14  ;;  %v1592_v19 = vld [vmem:[%s2290_s0 + $0x4] ss:$12 sps:$4 sm:$0xff]   ;;  %v1561_v20 = vld [vmem:[%s2291_s1] ss:$8 sps:$4 sm:$0xff]   ;;  %v1562_v21 = vld [vmem:[%s2291_s1 + $0xf4] ss:$8 sps:$4 sm:$0xff]  }
   0x8   :  { %750 = vmatprep.subr.bf16.mxu0 %v1544_v5  ;;  %778 = vmatprep.mubr.bf16.mxu0 %v1592_v19  ;;  %v1593_v22 = vld [vmem:[%s2290_s0 + $0x20] ss:$12 sps:$4 sm:$0xff]   ;;  %v1564_v23 = vld [vmem:[%s2291_s1 + $0xf0] ss:$8 sps:$4 sm:$0xff]   ;;  %v1568_v26 = vld [vmem:[%s2291_s1 + $0xd4] ss:$8 sps:$4 sm:$0xff]  }
   0x9   :  { %v1565_v24 = vld [vmem:[%s2291_s1 + $0xe4] ss:$8 sps:$4 sm:$0xff]   ;;  %v1567_v25 = vld [vmem:[%s2291_s1 + $0xe0] ss:$8 sps:$4 sm:$0xff]   ;;  %v1570_v28 = vld [vmem:[%s2291_s1 + $0xd0] ss:$8 sps:$4 sm:$0xff]  }
   0xa   :  { %1510 = vmatmul.mubr.msk.bf16.vlgmr.msra.gmra.mxu1 %vm673_vm0, %v1586_v16  ;;  %v1597_v27 = vld [vmem:[%s2290_s0 + $0x38] ss:$12 sps:$4 sm:$0xff]   ;;  %v1573_v30 = vld [vmem:[%s2291_s1 + $0xc0] ss:$8 sps:$4 sm:$0xff]   ;;  %v1574_v31 = vld [vmem:[%s2291_s1 + $0xb4] ss:$8 sps:$4 sm:$0xff]  }
   0xb   :  { %751 = vmatpush1.bf16.msra.mxu0 %v1546_v6  ;;  %1061 = vmatprep.mubr.bf16.mxu1 %v1707_v2  ;;  %v1571_v29 = vld [vmem:[%s2291_s1 + $0xc4] ss:$8 sps:$4 sm:$0xff]   ;;  %v1601_v32 = vld [vmem:[%s2290_s0 + $0x50] ss:$12 sps:$4 sm:$0xff]   ;;  %v1579_v35 = vld [vmem:[%s2291_s1 + $0xa0] ss:$8 sps:$4 sm:$0xff]  }
   0xc   :  { %752 = vmatprep.subr.bf16.mxu0 %v1547_v7  ;;  %v1576_v33 = vld [vmem:[%s2291_s1 + $0xb0] ss:$8 sps:$4 sm:$0xff]   ;;  %v1577_v34 = vld [vmem:[%s2291_s1 + $0xa4] ss:$8 sps:$4 sm:$0xff]   ;;  %v1583_v36 = vld [vmem:[%s2291_s1 + $0x94] ss:$8 sps:$4 sm:$0xff]  }
   0xd   :  { %v1605_v37 = vld [vmem:[%s2290_s0 + $0x68] ss:$12 sps:$4 sm:$0xff]   ;;  %v1585_v38 = vld [vmem:[%s2291_s1 + $0x90] ss:$8 sps:$4 sm:$0xff]   ;;  %v1587_v39 = vld [vmem:[%s2291_s1 + $0x84] ss:$8 sps:$4 sm:$0xff]  }
   0xe   :  { %v1589_v40 = vld [vmem:[%s2291_s1 + $0x80] ss:$8 sps:$4 sm:$0xff]   ;;  %v1613_v44 = vld [vmem:[%s2290_s0 + $0x98] ss:$12 sps:$4 sm:$0xff]  }
   0xf   :  { %753 = vmatpush1.bf16.msra.mxu0 %v1549_v8  ;;  %v1590_v41 = vld [vmem:[%s2290_s0] ss:$12 sps:$4 sm:$0xff]   ;;  %v1594_v43 = vld [vmem:[%s2290_s0 + $0x1c] ss:$12 sps:$4 sm:$0xff]   ;;  %v1596_v45 = vld [vmem:[%s2290_s0 + $0x18] ss:$12 sps:$4 sm:$0xff]  }
  0x10   :  { %754 = vmatprep.subr.bf16.mxu0 %v1550_v9  ;;  %v1609_v42 = vld [vmem:[%s2290_s0 + $0x80] ss:$12 sps:$4 sm:$0xff]  }
  0x11   :  { %v1598_v46 = vld [vmem:[%s2290_s0 + $0x34] ss:$12 sps:$4 sm:$0xff]  }
  0x12   :  { %1511 = vmatmul.mubr.msk.bf16.gmra.mxu1 %vm673_vm0, %v1593_v22 }
  0x13   :  { %755 = vmatpush1.bf16.msra.mxu0 %v1552_v10  ;;  %1071 = vmatprep.mubr.bf16.mxu1 %v1707_v2 }
  0x14   :  { %756 = vmatprep.subr.bf16.mxu0 %v1553_v11 }
  0x17   :  { %757 = vmatpush1.bf16.msra.mxu0 %v1555_v12 }
  0x18   :  { %758 = vmatprep.subr.bf16.mxu0 %v1556_v15 }
  0x1a   :  { %1512 = vmatmul.mubr.msk.bf16.gmra.mxu1 %vm673_vm0, %v1597_v27 }
  0x1b   :  { %759 = vmatpush1.bf16.msra.mxu0 %v1558_v17  ;;  %1081 = vmatprep.mubr.bf16.mxu1 %v1707_v2 }
  0x1c   :  { %760 = vmatprep.subr.bf16.mxu0 %v1559_v18 }
  0x1f   :  { %761 = vmatpush1.bf16.msra.mxu0 %v1561_v20 }
  0x20   :  { %762 = vmatprep.subr.bf16.mxu0 %v1562_v21 }
  0x22   :  { %1513 = vmatmul.mubr.msk.bf16.gmra.mxu1 %vm673_vm0, %v1601_v32 }
  0x23   :  { %763 = vmatpush2.bf16.msra.mxu0 %v1564_v23  ;;  %1091 = vmatprep.mubr.bf16.mxu1 %v1707_v2 }
  0x24   :  { %764 = vmatprep.subr.bf16.mxu0 %v1565_v24 }
  0x27   :  { %765 = vmatpush2.bf16.msra.mxu0 %v1567_v25 }
  0x28   :  { %766 = vmatprep.subr.bf16.mxu0 %v1568_v26 }
  0x2a   :  { %1514 = vmatmul.mubr.msk.bf16.gmra.mxu1 %vm673_vm0, %v1605_v37 }
  0x2b   :  { %767 = vmatpush2.bf16.msra.mxu0 %v1570_v28  ;;  %1101 = vmatprep.mubr.bf16.mxu1 %v1707_v2 }
  0x2c   :  { %768 = vmatprep.subr.bf16.mxu0 %v1571_v29 }
  0x2f   :  { %769 = vmatpush2.bf16.msra.mxu0 %v1573_v30 }
  0x30   :  { %770 = vmatprep.subr.bf16.mxu0 %v1574_v31 }
  0x32   :  { %1515 = vmatmul.mubr.msk.bf16.gmra.mxu1 %vm673_vm0, %v1609_v42 }
  0x33   :  { %771 = vmatpush2.bf16.msra.mxu0 %v1576_v33  ;;  %1111 = vmatprep.mubr.bf16.mxu1 %v1707_v2 }
  0x34   :  { %772 = vmatprep.subr.bf16.mxu0 %v1577_v34 }
  0x37   :  { %773 = vmatpush2.bf16.msra.mxu0 %v1579_v35 }
  0x38   :  { %774 = vmatprep.subr.bf16.mxu0 %v1583_v36 }
  0x3b   :  { %775 = vmatpush2.bf16.msra.mxu0 %v1585_v38 }
  0x3c   :  { %776 = vmatprep.subr.bf16.mxu0 %v1587_v39 }
  0x3f   :  { %777 = vmatpush2.bf16.msra.mxu0 %v1589_v40 }
  0x42   :  { %779 = vmatmul.mubr.bf16.vlgmr.msra.gmra.mxu0 %v1590_v41 }
  0x43   :  { %788 = vmatprep.mubr.bf16.mxu0 %v1594_v43 }
  0x44   :  { %7 = vsyncpa [#allocation3], 0  ;;  %1516 = vmatmul.mubr.msk.bf16.gmra.mxu1 %vm673_vm0, %v1613_v44  ;;  %v1617_v47 = vld [vmem:[%s2290_s0 + $0xb0] ss:$12 sps:$4 sm:$0xff]   ;;  %v1602_v49 = vld [vmem:[%s2290_s0 + $0x4c] ss:$12 sps:$4 sm:$0xff]  }
  0x45   :  { %1121 = vmatprep.mubr.bf16.mxu1 %v1707_v2  ;;  %v1600_v48 = vld [vmem:[%s2290_s0 + $0x30] ss:$12 sps:$4 sm:$0xff]   ;;  %v1621_v50 = vld [vmem:[%s2290_s0 + $0xc8] ss:$12 sps:$4 sm:$0xff]   ;;  %v1625_v53 = vld [vmem:[%s2290_s0 + $0xe0] ss:$12 sps:$4 sm:$0xff]  }
  0x46   :  { %v1604_v51 = vld [vmem:[%s2290_s0 + $0x48] ss:$12 sps:$4 sm:$0xff]   ;;  %v1606_v52 = vld [vmem:[%s2290_s0 + $0x64] ss:$12 sps:$4 sm:$0xff]   ;;  %v1608_v54 = vld [vmem:[%s2290_s0 + $0x60] ss:$12 sps:$4 sm:$0xff]  }
  0x47   :  { %v1610_v55 = vld [vmem:[%s2290_s0 + $0x7c] ss:$12 sps:$4 sm:$0xff]   ;;  %v1629_v56 = vld [vmem:[%s2290_s0 + $0xf8] ss:$12 sps:$4 sm:$0xff]   ;;  %v1614_v58 = vld [vmem:[%s2290_s0 + $0x94] ss:$12 sps:$4 sm:$0xff]  }
  0x48   :  { %v1612_v57 = vld [vmem:[%s2290_s0 + $0x78] ss:$12 sps:$4 sm:$0xff]   ;;  %v1633_v59 = vld [vmem:[%s2290_s0 + $0x110] ss:$12 sps:$4 sm:$0xff]   ;;  %v1637_v62 = vld [vmem:[%s2290_s0 + $0x128] ss:$12 sps:$4 sm:$0xff]  }
  0x49   :  { %v1616_v60 = vld [vmem:[%s2290_s0 + $0x90] ss:$12 sps:$4 sm:$0xff]   ;;  %v1618_v61 = vld [vmem:[%s2290_s0 + $0xac] ss:$12 sps:$4 sm:$0xff]   ;;  %v1620_v63 = vld [vmem:[%s2290_s0 + $0xa8] ss:$12 sps:$4 sm:$0xff]  }
  0x4a   :  { %789 = vmatmul.mubr.bf16.gmra.mxu0 %v1596_v45  ;;  %v1622_v0 = vld [vmem:[%s2290_s0 + $0xc4] ss:$12 sps:$4 sm:$0xff]   ;;  %v1641_v1 = vld [vmem:[%s2290_s0 + $0x140] ss:$12 sps:$4 sm:$0xff]   ;;  %v1626_v4 = vld [vmem:[%s2290_s0 + $0xdc] ss:$12 sps:$4 sm:$0xff]  }
  0x4b   :  { %798 = vmatprep.mubr.bf16.mxu0 %v1598_v46  ;;  %v1624_v3 = vld [vmem:[%s2290_s0 + $0xc0] ss:$12 sps:$4 sm:$0xff]   ;;  %v1645_v5 = vld [vmem:[%s2290_s0 + $0x158] ss:$12 sps:$4 sm:$0xff]   ;;  %v1649_v8 = vld [vmem:[%s2290_s0 + $0x170] ss:$12 sps:$4 sm:$0xff]  }
  0x4c   :  { %1517 = vmatmul.mubr.msk.bf16.gmra.mxu1 %vm673_vm0, %v1617_v47  ;;  %v1628_v6 = vld [vmem:[%s2290_s0 + $0xd8] ss:$12 sps:$4 sm:$0xff]   ;;  %v1630_v7 = vld [vmem:[%s2290_s0 + $0xf4] ss:$12 sps:$4 sm:$0xff]   ;;  %v1632_v9 = vld [vmem:[%s2290_s0 + $0xf0] ss:$12 sps:$4 sm:$0xff]  }
  0x4d   :  { %1131 = vmatprep.mubr.bf16.mxu1 %v1707_v2  ;;  %v1634_v10 = vld [vmem:[%s2290_s0 + $0x10c] ss:$12 sps:$4 sm:$0xff]   ;;  %v1653_v11 = vld [vmem:[%s2290_s0 + $0x188] ss:$12 sps:$4 sm:$0xff]   ;;  %v1638_v13 = vld [vmem:[%s2290_s0 + $0x124] ss:$12 sps:$4 sm:$0xff]  }
  0x4e   :  { %v1636_v12 = vld [vmem:[%s2290_s0 + $0x108] ss:$12 sps:$4 sm:$0xff]   ;;  %v1657_v14 = vld [vmem:[%s2290_s0 + $0x1a0] ss:$12 sps:$4 sm:$0xff]   ;;  %v1661_v17 = vld [vmem:[%s2290_s0 + $0x1b8] ss:$12 sps:$4 sm:$0xff]  }
  0x4f   :  { %v1640_v15 = vld [vmem:[%s2290_s0 + $0x120] ss:$12 sps:$4 sm:$0xff]   ;;  %v1642_v16 = vld [vmem:[%s2290_s0 + $0x13c] ss:$12 sps:$4 sm:$0xff]   ;;  %v1644_v18 = vld [vmem:[%s2290_s0 + $0x138] ss:$12 sps:$4 sm:$0xff]  }
  0x50   :  { %v1646_v19 = vld [vmem:[%s2290_s0 + $0x154] ss:$12 sps:$4 sm:$0xff]   ;;  %v1665_v20 = vld [vmem:[%s2290_s0 + $0x1d0] ss:$12 sps:$4 sm:$0xff]   ;;  %v1650_v22 = vld [vmem:[%s2290_s0 + $0x16c] ss:$12 sps:$4 sm:$0xff]  }
  0x51   :  { %v1648_v21 = vld [vmem:[%s2290_s0 + $0x150] ss:$12 sps:$4 sm:$0xff]   ;;  %v1669_v23 = vld [vmem:[%s2290_s0 + $0x1e8] ss:$12 sps:$4 sm:$0xff]   ;;  %v1673_v26 = vld [vmem:[%s2290_s0 + $0x200] ss:$12 sps:$4 sm:$0xff]  }
  0x52   :  { %799 = vmatmul.mubr.bf16.gmra.mxu0 %v1600_v48  ;;  %v1652_v24 = vld [vmem:[%s2290_s0 + $0x168] ss:$12 sps:$4 sm:$0xff]   ;;  %v1654_v25 = vld [vmem:[%s2290_s0 + $0x184] ss:$12 sps:$4 sm:$0xff]   ;;  %v1656_v27 = vld [vmem:[%s2290_s0 + $0x180] ss:$12 sps:$4 sm:$0xff]  }
  0x53   :  { %808 = vmatprep.mubr.bf16.mxu0 %v1602_v49  ;;  %v1658_v28 = vld [vmem:[%s2290_s0 + $0x19c] ss:$12 sps:$4 sm:$0xff]   ;;  %v1677_v29 = vld [vmem:[%s2290_s0 + $0x218] ss:$12 sps:$4 sm:$0xff]   ;;  %v1662_v31 = vld [vmem:[%s2290_s0 + $0x1b4] ss:$12 sps:$4 sm:$0xff]  }
  0x54   :  { %1518 = vmatmul.mubr.msk.bf16.gmra.mxu1 %vm673_vm0, %v1621_v50  ;;  %v1660_v30 = vld [vmem:[%s2290_s0 + $0x198] ss:$12 sps:$4 sm:$0xff]   ;;  %v1681_v32 = vld [vmem:[%s2290_s0 + $0x230] ss:$12 sps:$4 sm:$0xff]   ;;  %v1672_v39 = vld [vmem:[%s2290_s0 + $0x1e0] ss:$12 sps:$4 sm:$0xff]  }
  0x55   :  { %1141 = vmatprep.mubr.bf16.mxu1 %v1707_v2  ;;  %v1664_v33 = vld [vmem:[%s2290_s0 + $0x1b0] ss:$12 sps:$4 sm:$0xff]   ;;  %v1666_v34 = vld [vmem:[%s2290_s0 + $0x1cc] ss:$12 sps:$4 sm:$0xff]   ;;  %v1678_v46 = vld [vmem:[%s2290_s0 + $0x214] ss:$12 sps:$4 sm:$0xff]  }
  0x56   :  { %v1670_v35 = vld [vmem:[%s2290_s0 + $0x1e4] ss:$12 sps:$4 sm:$0xff]   ;;  %v1674_v40 = vld [vmem:[%s2290_s0 + $0x1fc] ss:$12 sps:$4 sm:$0xff]  }
  0x57   :  { %v1676_v45 = vld [vmem:[%s2290_s0 + $0x1f8] ss:$12 sps:$4 sm:$0xff]  }
  0x5a   :  { %809 = vmatmul.mubr.bf16.gmra.mxu0 %v1604_v51  ;;  %v1680_v51 = vld [vmem:[%s2290_s0 + $0x210] ss:$12 sps:$4 sm:$0xff]  }
  0x5b   :  { %818 = vmatprep.mubr.bf16.mxu0 %v1606_v52  ;;  %v1682_v52 = vld [vmem:[%s2290_s0 + $0x22c] ss:$12 sps:$4 sm:$0xff]  }
  0x5c   :  { %1519 = vmatmul.mubr.msk.bf16.gmra.mxu1 %vm673_vm0, %v1625_v53 }
  0x5d   :  { %1151 = vmatprep.mubr.bf16.mxu1 %v1707_v2 }
  0x62   :  { %819 = vmatmul.mubr.bf16.gmra.mxu0 %v1608_v54 }
  0x63   :  { %828 = vmatprep.mubr.bf16.mxu0 %v1610_v55 }
  0x64   :  { %1520 = vmatmul.mubr.msk.bf16.gmra.mxu1 %vm673_vm0, %v1629_v56 }
  0x65   :  { %1161 = vmatprep.mubr.bf16.mxu1 %v1707_v2 }
  0x6a   :  { %829 = vmatmul.mubr.bf16.gmra.mxu0 %v1612_v57  ;;  %v1684_v57 = vld [vmem:[%s2290_s0 + $0x228] ss:$12 sps:$4 sm:$0xff]  }
  0x6b   :  { %838 = vmatprep.mubr.bf16.mxu0 %v1614_v58 }
  0x6c   :  { %1521 = vmatmul.mubr.msk.bf16.gmra.mxu1 %vm673_vm0, %v1633_v59 }
  0x6d   :  { %1171 = vmatprep.mubr.bf16.mxu1 %v1707_v2 }
  0x72   :  { %839 = vmatmul.mubr.bf16.gmra.mxu0 %v1616_v60 }
  0x73   :  { %848 = vmatprep.mubr.bf16.mxu0 %v1618_v61 }
  0x74   :  { %1522 = vmatmul.mubr.msk.bf16.gmra.mxu1 %vm673_vm0, %v1637_v62 }
  0x75   :  { %1181 = vmatprep.mubr.bf16.mxu1 %v1707_v2 }
  0x7a   :  { %849 = vmatmul.mubr.bf16.gmra.mxu0 %v1620_v63 }
  0x7b   :  { %858 = vmatprep.mubr.bf16.mxu0 %v1622_v0 }
  0x7c   :  { %1523 = vmatmul.mubr.msk.bf16.gmra.mxu1 %vm673_vm0, %v1641_v1 }
  0x7d   :  { %1191 = vmatprep.mubr.bf16.mxu1 %v1707_v2 }
  0x82   :  { %859 = vmatmul.mubr.bf16.gmra.mxu0 %v1624_v3 }
  0x83   :  { %868 = vmatprep.mubr.bf16.mxu0 %v1626_v4 }
  0x84   :  { %1524 = vmatmul.mubr.msk.bf16.gmra.mxu1 %vm673_vm0, %v1645_v5 }
  0x85   :  { %1201 = vmatprep.mubr.bf16.mxu1 %v1707_v2 }
  0x8a   :  { %869 = vmatmul.mubr.bf16.gmra.mxu0 %v1628_v6 }
  0x8b   :  { %878 = vmatprep.mubr.bf16.mxu0 %v1630_v7 }
  0x8c   :  { %1525 = vmatmul.mubr.msk.bf16.gmra.mxu1 %vm673_vm0, %v1649_v8 }
  0x8d   :  { %1211 = vmatprep.mubr.bf16.mxu1 %v1707_v2 }
  0x92   :  { %879 = vmatmul.mubr.bf16.gmra.mxu0 %v1632_v9 }
  0x93   :  { %888 = vmatprep.mubr.bf16.mxu0 %v1634_v10 }
  0x94   :  { %1526 = vmatmul.mubr.msk.bf16.gmra.mxu1 %vm673_vm0, %v1653_v11 }
  0x95   :  { %1221 = vmatprep.mubr.bf16.mxu1 %v1707_v2 }
  0x9a   :  { %889 = vmatmul.mubr.bf16.gmra.mxu0 %v1636_v12 }
  0x9b   :  { %898 = vmatprep.mubr.bf16.mxu0 %v1638_v13 }
  0x9c   :  { %1527 = vmatmul.mubr.msk.bf16.gmra.mxu1 %vm673_vm0, %v1657_v14 }
  0x9d   :  { %1231 = vmatprep.mubr.bf16.mxu1 %v1707_v2 }
  0xa2   :  { %899 = vmatmul.mubr.bf16.gmra.mxu0 %v1640_v15 }
  0xa3   :  { %908 = vmatprep.mubr.bf16.mxu0 %v1642_v16 }
  0xa4   :  { %1528 = vmatmul.mubr.msk.bf16.gmra.mxu1 %vm673_vm0, %v1661_v17 }
  0xa5   :  { %1241 = vmatprep.mubr.bf16.mxu1 %v1707_v2 }
  0xaa   :  { %909 = vmatmul.mubr.bf16.gmra.mxu0 %v1644_v18 }
  0xab   :  { %918 = vmatprep.mubr.bf16.mxu0 %v1646_v19 }
  0xac   :  { %1529 = vmatmul.mubr.msk.bf16.gmra.mxu1 %vm673_vm0, %v1665_v20 }
  0xad   :  { %1251 = vmatprep.mubr.bf16.mxu1 %v1707_v2 }
  0xb2   :  { %919 = vmatmul.mubr.bf16.gmra.mxu0 %v1648_v21 }
  0xb3   :  { %928 = vmatprep.mubr.bf16.mxu0 %v1650_v22 }
  0xb4   :  { %1530 = vmatmul.mubr.msk.bf16.gmra.mxu1 %vm673_vm0, %v1669_v23 }
  0xb5   :  { %1261 = vmatprep.mubr.bf16.mxu1 %v1707_v2 }
  0xba   :  { %929 = vmatmul.mubr.bf16.gmra.mxu0 %v1652_v24 }
  0xbb   :  { %938 = vmatprep.mubr.bf16.mxu0 %v1654_v25 }
  0xbc   :  { %1531 = vmatmul.mubr.msk.bf16.gmra.mxu1 %vm673_vm0, %v1673_v26 }
  0xbd   :  { %1271 = vmatprep.mubr.bf16.mxu1 %v1707_v2 }
  0xc2   :  { %939 = vmatmul.mubr.bf16.gmra.mxu0 %v1656_v27 }
  0xc3   :  { %948 = vmatprep.mubr.bf16.mxu0 %v1658_v28 }
  0xc4   :  { %1532 = vmatmul.mubr.msk.bf16.gmra.mxu1 %vm673_vm0, %v1677_v29 }
  0xc5   :  { %1281 = vmatprep.mubr.bf16.mxu1 %v1707_v2  ;;  %v1668_v2 = vld [vmem:[%s2290_s0 + $0x1c8] ss:$12 sps:$4 sm:$0xff]   ;;  %s1708_s0 = smov [#allocation2]  }
  0xc6   :  { %s1393_s20 = sshll.u32 %s1708_s0, 4  ;;  %s1394_s20 = int_to_ptr.vmem [resolvable:$true] %s1393_s20 }
  0xc7   :  { %s1685_s21 = scalar_lea.vmem %s1394_s20, 12288  ;;  %p1690_p1 = scmp.lt.s32.totalorder %s1394_s20, %s1394_s20 }
  0xc8   :  { %p1686_p0 = scmp.ne.s32.totalorder %s1394_s20, %s1685_s21  ;;  %p1691_p2 = scmp.lt.s32.totalorder %s1685_s21, %s1685_s21 }
  0xca   :  { %949 = vmatmul.mubr.bf16.gmra.mxu0 %v1660_v30  ;;  %v1053_v36 = vpop.f32.mrf.mxu1  ;;  %p1692_p3 = por %p1691_p2, %p1690_p1 }
  0xcb   :  { %958 = vmatprep.mubr.bf16.mxu0 %v1662_v31 }
  0xcc   :  { %1533 = vmatmul.mubr.msk.bf16.gmra.mxu1 %vm673_vm0, %v1681_v32  ;;  %v1055_v37 = vpop.f32.mrf.mxu1  ;;  %p1693_p4 = pnand %p1692_p3, %p1686_p0 }
  0xce   :  { %v1057_v38 = vpop.f32.mrf.mxu1 }
  0xd0   :  { %v1059_v41 = vpop.f32.mrf.mxu1 }
  0xd2   :  { %959 = vmatmul.mubr.bf16.gmra.mxu0 %v1664_v33  ;;  %v1063_v42 = vpop.f32.mrf.mxu1 }
  0xd3   :  { %968 = vmatprep.mubr.bf16.mxu0 %v1666_v34 }
  0xd4   :  { %v1065_v43 = vpop.f32.mrf.mxu1 }
  0xd6   :  { %v1067_v44 = vpop.f32.mrf.mxu1 }
  0xd8   :  { %v1069_v47 = vpop.f32.mrf.mxu1 }
  0xda   :  { %969 = vmatmul.mubr.bf16.gmra.mxu0 %v1668_v2  ;;  %v1073_v48 = vpop.f32.mrf.mxu1 }
  0xdb   :  { %978 = vmatprep.mubr.bf16.mxu0 %v1670_v35 }
  0xdc   :  { %v1075_v49 = vpop.f32.mrf.mxu1 }
  0xde   :  { %v1077_v50 = vpop.f32.mrf.mxu1 }
  0xe0   :  { %v1079_v53 = vpop.f32.mrf.mxu1 }
  0xe2   :  { %979 = vmatmul.mubr.bf16.gmra.mxu0 %v1672_v39  ;;  %v1083_v54 = vpop.f32.mrf.mxu1 }
  0xe3   :  { %988 = vmatprep.mubr.bf16.mxu0 %v1674_v40 }
  0xe4   :  { %v2089_v55 = vpop.f32.mrf.mxu1 }
  0xe6   :  { %v2091_v56 = vpop.f32.mrf.mxu1 }
  0xe8   :  { %v2096_v58 = vpop.f32.mrf.mxu1 }
  0xea   :  { %989 = vmatmul.mubr.bf16.gmra.mxu0 %v1676_v45  ;;  %v2098_v59 = vpop.f32.mrf.mxu1 }
  0xeb   :  { %998 = vmatprep.mubr.bf16.mxu0 %v1678_v46 }
  0xec   :  { %v2100_v60 = vpop.f32.mrf.mxu1 }
  0xee   :  { %v2102_v61 = vpop.f32.mrf.mxu1 }
  0xf0   :  { %v2104_v62 = vpop.f32.mrf.mxu1 }
  0xf2   :  { %999 = vmatmul.mubr.bf16.gmra.mxu0 %v1680_v51  ;;  %v2106_v63 = vpop.f32.mrf.mxu1 }
  0xf3   :  { %1008 = vmatprep.mubr.bf16.mxu0 %v1682_v52 }
  0xf4   :  { %v2108_v3 = vpop.f32.mrf.mxu1 }
  0xf6   :  { %v2110_v6 = vpop.f32.mrf.mxu1 }
  0xf8   :  { %v2112_v9 = vpop.f32.mrf.mxu1 }
  0xfa   :  { %1009 = vmatmul.mubr.bf16.gmra.mxu0 %v1684_v57 }
 0x102   :  { %v780_v0 = vpop.f32.mrf.mxu0 }
 0x103   :  { %v1054_v1 = vadd.f32 %v1053_v36, %v780_v0 }
 0x104   :  { %v782_v4 = vpop.f32.mrf.mxu0  ;;  %v2114_v12 = vpop.f32.mrf.mxu1 }
 0x105   :  { %1292 = vst [vmem:[#allocation2] sm:$0xff] %v1054_v1  ;;  %v1056_v5 = vadd.f32 %v1055_v37, %v782_v4 }
 0x106   :  { %v784_v7 = vpop.f32.mrf.mxu0  ;;  %v2116_v15 = vpop.f32.mrf.mxu1 }
 0x107   :  { %1293 = vst [vmem:[#allocation2 + $0x8] sm:$0xff] %v1056_v5  ;;  %v1058_v8 = vadd.f32 %v1057_v38, %v784_v7 }
 0x108   :  { %v786_v10 = vpop.f32.mrf.mxu0  ;;  %v2118_v18 = vpop.f32.mrf.mxu1 }
 0x109   :  { %1294 = vst [vmem:[#allocation2 + $0x10] sm:$0xff] %v1058_v8  ;;  %v1060_v11 = vadd.f32 %v1059_v41, %v786_v10 }
 0x10a   :  { %v790_v13 = vpop.f32.mrf.mxu0  ;;  %v2120_v21 = vpop.f32.mrf.mxu1 }
 0x10b   :  { %1295 = vst [vmem:[#allocation2 + $0x18] sm:$0xff] %v1060_v11  ;;  %v1064_v14 = vadd.f32 %v1063_v42, %v790_v13 }
 0x10c   :  { %v792_v16 = vpop.f32.mrf.mxu0  ;;  %v2122_v24 = vpop.f32.mrf.mxu1 }
 0x10d   :  { %1296 = vst [vmem:[#allocation2 + $0x20] sm:$0xff] %v1064_v14  ;;  %v1066_v17 = vadd.f32 %v1065_v43, %v792_v16 }
 0x10e   :  { %v794_v19 = vpop.f32.mrf.mxu0  ;;  %v2124_v27 = vpop.f32.mrf.mxu1 }
 0x10f   :  { %1297 = vst [vmem:[#allocation2 + $0x28] sm:$0xff] %v1066_v17  ;;  %v1068_v20 = vadd.f32 %v1067_v44, %v794_v19 }
 0x110   :  { %v796_v22 = vpop.f32.mrf.mxu0  ;;  %v2126_v30 = vpop.f32.mrf.mxu1 }
 0x111   :  { %1298 = vst [vmem:[#allocation2 + $0x30] sm:$0xff] %v1068_v20  ;;  %v1070_v23 = vadd.f32 %v1069_v47, %v796_v22 }
 0x112   :  { %v800_v25 = vpop.f32.mrf.mxu0  ;;  %v2128_v33 = vpop.f32.mrf.mxu1 }
 0x113   :  { %1299 = vst [vmem:[#allocation2 + $0x38] sm:$0xff] %v1070_v23  ;;  %v1074_v26 = vadd.f32 %v1073_v48, %v800_v25 }
 0x114   :  { %v802_v28 = vpop.f32.mrf.mxu0  ;;  %v2130_v35 = vpop.f32.mrf.mxu1 }
 0x115   :  { %1300 = vst [vmem:[#allocation2 + $0x40] sm:$0xff] %v1074_v26  ;;  %v1076_v29 = vadd.f32 %v1075_v49, %v802_v28 }
 0x116   :  { %v804_v31 = vpop.f32.mrf.mxu0  ;;  %v2132_v38 = vpop.f32.mrf.mxu1 }
 0x117   :  { %1301 = vst [vmem:[#allocation2 + $0x48] sm:$0xff] %v1076_v29  ;;  %v1078_v32 = vadd.f32 %v1077_v50, %v804_v31 }
 0x118   :  { %v806_v34 = vpop.f32.mrf.mxu0  ;;  %v2135_v41 = vpop.f32.mrf.mxu1 }
 0x119   :  { %1302 = vst [vmem:[#allocation2 + $0x50] sm:$0xff] %v1078_v32  ;;  %v1080_v2 = vadd.f32 %v1079_v53, %v806_v34 }
 0x11a   :  { %v810_v36 = vpop.f32.mrf.mxu0  ;;  %v2138_v44 = vpop.f32.mrf.mxu1 }
 0x11b   :  { %1303 = vst [vmem:[#allocation2 + $0x58] sm:$0xff] %v1080_v2  ;;  %v1084_v37 = vadd.f32 %v1083_v54, %v810_v36 }
 0x11c   :  { %v812_v39 = vpop.f32.mrf.mxu0  ;;  %v2141_v47 = vpop.f32.mrf.mxu1 }
 0x11d   :  { %1304 = vst [vmem:[#allocation2 + $0x60] sm:$0xff] %v1084_v37  ;;  %v1086_v40 = vadd.f32 %v2089_v55, %v812_v39 }
 0x11e   :  { %v814_v42 = vpop.f32.mrf.mxu0  ;;  %v2144_v50 = vpop.f32.mrf.mxu1 }
 0x11f   :  { %1305 = vst [vmem:[#allocation2 + $0x68] sm:$0xff] %v1086_v40  ;;  %v1088_v43 = vadd.f32 %v2091_v56, %v814_v42 }
 0x120   :  { %v816_v45 = vpop.f32.mrf.mxu0  ;;  %v2147_v53 = vpop.f32.mrf.mxu1 }
 0x121   :  { %1306 = vst [vmem:[#allocation2 + $0x70] sm:$0xff] %v1088_v43  ;;  %v1090_v46 = vadd.f32 %v2096_v58, %v816_v45 }
 0x122   :  { %v820_v48 = vpop.f32.mrf.mxu0  ;;  %v2150_v56 = vpop.f32.mrf.mxu1 }
 0x123   :  { %1307 = vst [vmem:[#allocation2 + $0x78] sm:$0xff] %v1090_v46  ;;  %v1094_v49 = vadd.f32 %v2098_v59, %v820_v48 }
 0x124   :  { %v822_v51 = vpop.f32.mrf.mxu0  ;;  %v2153_v0 = vpop.f32.mrf.mxu1 }
 0x125   :  { %1308 = vst [vmem:[#allocation2 + $0x80] sm:$0xff] %v1094_v49  ;;  %v1096_v52 = vadd.f32 %v2100_v60, %v822_v51 }
 0x126   :  { %v824_v54 = vpop.f32.mrf.mxu0  ;;  %v2156_v4 = vpop.f32.mrf.mxu1 }
 0x127   :  { %1309 = vst [vmem:[#allocation2 + $0x88] sm:$0xff] %v1096_v52  ;;  %v1098_v55 = vadd.f32 %v2102_v61, %v824_v54 }
 0x128   :  { %v826_v57 = vpop.f32.mrf.mxu0  ;;  %v2159_v7 = vpop.f32.mrf.mxu1 }
 0x129   :  { %1310 = vst [vmem:[#allocation2 + $0x90] sm:$0xff] %v1098_v55  ;;  %v1100_v58 = vadd.f32 %v2104_v62, %v826_v57 }
 0x12a   :  { %v830_v59 = vpop.f32.mrf.mxu0  ;;  %v2162_v10 = vpop.f32.mrf.mxu1 }
 0x12b   :  { %1311 = vst [vmem:[#allocation2 + $0x98] sm:$0xff] %v1100_v58  ;;  %v1104_v1 = vadd.f32 %v2106_v63, %v830_v59 }
 0x12c   :  { %v832_v60 = vpop.f32.mrf.mxu0  ;;  %v2165_v13 = vpop.f32.mrf.mxu1 }
 0x12d   :  { %1312 = vst [vmem:[#allocation2 + $0xa0] sm:$0xff] %v1104_v1  ;;  %v1106_v5 = vadd.f32 %v2108_v3, %v832_v60 }
 0x12e   :  { %v834_v61 = vpop.f32.mrf.mxu0  ;;  %v2168_v16 = vpop.f32.mrf.mxu1 }
 0x12f   :  { %1313 = vst [vmem:[#allocation2 + $0xa8] sm:$0xff] %v1106_v5  ;;  %v1108_v8 = vadd.f32 %v2110_v6, %v834_v61 }
 0x130   :  { %v836_v62 = vpop.f32.mrf.mxu0  ;;  %v2171_v19 = vpop.f32.mrf.mxu1 }
 0x131   :  { %1314 = vst [vmem:[#allocation2 + $0xb0] sm:$0xff] %v1108_v8  ;;  %v1110_v11 = vadd.f32 %v2112_v9, %v836_v62 }
 0x132   :  { %v840_v63 = vpop.f32.mrf.mxu0  ;;  %v2174_v22 = vpop.f32.mrf.mxu1 }
 0x133   :  { %1315 = vst [vmem:[#allocation2 + $0xb8] sm:$0xff] %v1110_v11  ;;  %v1114_v14 = vadd.f32 %v2114_v12, %v840_v63 }
 0x134   :  { %v842_v3 = vpop.f32.mrf.mxu0  ;;  %v2177_v25 = vpop.f32.mrf.mxu1 }
 0x135   :  { %1316 = vst [vmem:[#allocation2 + $0xc0] sm:$0xff] %v1114_v14  ;;  %v1116_v17 = vadd.f32 %v2116_v15, %v842_v3 }
 0x136   :  { %v844_v6 = vpop.f32.mrf.mxu0  ;;  %v2180_v28 = vpop.f32.mrf.mxu1 }
 0x137   :  { %1317 = vst [vmem:[#allocation2 + $0xc8] sm:$0xff] %v1116_v17  ;;  %v1118_v20 = vadd.f32 %v2118_v18, %v844_v6 }
 0x138   :  { %v846_v9 = vpop.f32.mrf.mxu0  ;;  %v2183_v31 = vpop.f32.mrf.mxu1 }
 0x139   :  { %1318 = vst [vmem:[#allocation2 + $0xd0] sm:$0xff] %v1118_v20  ;;  %v1120_v23 = vadd.f32 %v2120_v21, %v846_v9 }
 0x13a   :  { %v850_v12 = vpop.f32.mrf.mxu0  ;;  %v2186_v34 = vpop.f32.mrf.mxu1 }
 0x13b   :  { %1319 = vst [vmem:[#allocation2 + $0xd8] sm:$0xff] %v1120_v23  ;;  %v1124_v26 = vadd.f32 %v2122_v24, %v850_v12 }
 0x13c   :  { %v852_v15 = vpop.f32.mrf.mxu0  ;;  %v2189_v36 = vpop.f32.mrf.mxu1 }
 0x13d   :  { %1320 = vst [vmem:[#allocation2 + $0xe0] sm:$0xff] %v1124_v26  ;;  %v1126_v29 = vadd.f32 %v2124_v27, %v852_v15 }
 0x13e   :  { %v854_v18 = vpop.f32.mrf.mxu0  ;;  %v2192_v39 = vpop.f32.mrf.mxu1 }
 0x13f   :  { %1321 = vst [vmem:[#allocation2 + $0xe8] sm:$0xff] %v1126_v29  ;;  %v1128_v32 = vadd.f32 %v2126_v30, %v854_v18 }
 0x140   :  { %v856_v21 = vpop.f32.mrf.mxu0  ;;  %v2195_v42 = vpop.f32.mrf.mxu1 }
 0x141   :  { %1322 = vst [vmem:[#allocation2 + $0xf0] sm:$0xff] %v1128_v32  ;;  %v1130_v2 = vadd.f32 %v2128_v33, %v856_v21 }
 0x142   :  { %v860_v24 = vpop.f32.mrf.mxu0  ;;  %v2198_v45 = vpop.f32.mrf.mxu1 }
 0x143   :  { %1323 = vst [vmem:[#allocation2 + $0xf8] sm:$0xff] %v1130_v2  ;;  %v1134_v37 = vadd.f32 %v2130_v35, %v860_v24 }
 0x144   :  { %v862_v27 = vpop.f32.mrf.mxu0  ;;  %v2201_v48 = vpop.f32.mrf.mxu1 }
 0x145   :  { %1324 = vst [vmem:[#allocation2 + $0x100] sm:$0xff] %v1134_v37  ;;  %v1136_v40 = vadd.f32 %v2132_v38, %v862_v27 }
 0x146   :  { %v864_v30 = vpop.f32.mrf.mxu0  ;;  %v2204_v51 = vpop.f32.mrf.mxu1 }
 0x147   :  { %1325 = vst [vmem:[#allocation2 + $0x108] sm:$0xff] %v1136_v40  ;;  %v1138_v43 = vadd.f32 %v2135_v41, %v864_v30 }
 0x148   :  { %v866_v33 = vpop.f32.mrf.mxu0  ;;  %v2207_v54 = vpop.f32.mrf.mxu1 }
 0x149   :  { %1326 = vst [vmem:[#allocation2 + $0x110] sm:$0xff] %v1138_v43  ;;  %v1140_v46 = vadd.f32 %v2138_v44, %v866_v33 }
 0x14a   :  { %v870_v35 = vpop.f32.mrf.mxu0  ;;  %v2210_v57 = vpop.f32.mrf.mxu1 }
 0x14b   :  { %1327 = vst [vmem:[#allocation2 + $0x118] sm:$0xff] %v1140_v46  ;;  %v1144_v49 = vadd.f32 %v2141_v47, %v870_v35 }
 0x14c   :  { %v872_v38 = vpop.f32.mrf.mxu0  ;;  %v2213_v59 = vpop.f32.mrf.mxu1 }
 0x14d   :  { %1328 = vst [vmem:[#allocation2 + $0x120] sm:$0xff] %v1144_v49  ;;  %v1146_v52 = vadd.f32 %v2144_v50, %v872_v38 }
 0x14e   :  { %v874_v41 = vpop.f32.mrf.mxu0  ;;  %v2216_v60 = vpop.f32.mrf.mxu1 }
 0x14f   :  { %1329 = vst [vmem:[#allocation2 + $0x128] sm:$0xff] %v1146_v52  ;;  %v1148_v55 = vadd.f32 %v2147_v53, %v874_v41 }
 0x150   :  { %v876_v44 = vpop.f32.mrf.mxu0  ;;  %v2219_v61 = vpop.f32.mrf.mxu1 }
 0x151   :  { %1330 = vst [vmem:[#allocation2 + $0x130] sm:$0xff] %v1148_v55  ;;  %v1150_v58 = vadd.f32 %v2150_v56, %v876_v44 }
 0x152   :  { %v880_v47 = vpop.f32.mrf.mxu0  ;;  %v2222_v62 = vpop.f32.mrf.mxu1 }
 0x153   :  { %1331 = vst [vmem:[#allocation2 + $0x138] sm:$0xff] %v1150_v58  ;;  %v1154_v1 = vadd.f32 %v2153_v0, %v880_v47 }
 0x154   :  { %v882_v50 = vpop.f32.mrf.mxu0  ;;  %v2225_v63 = vpop.f32.mrf.mxu1 }
 0x155   :  { %1332 = vst [vmem:[#allocation2 + $0x140] sm:$0xff] %v1154_v1  ;;  %v1156_v5 = vadd.f32 %v2156_v4, %v882_v50 }
 0x156   :  { %v884_v53 = vpop.f32.mrf.mxu0  ;;  %v2228_v3 = vpop.f32.mrf.mxu1 }
 0x157   :  { %1333 = vst [vmem:[#allocation2 + $0x148] sm:$0xff] %v1156_v5  ;;  %v1158_v8 = vadd.f32 %v2159_v7, %v884_v53 }
 0x158   :  { %v886_v56 = vpop.f32.mrf.mxu0  ;;  %v2231_v6 = vpop.f32.mrf.mxu1 }
 0x159   :  { %1334 = vst [vmem:[#allocation2 + $0x150] sm:$0xff] %v1158_v8  ;;  %v1160_v11 = vadd.f32 %v2162_v10, %v886_v56 }
 0x15a   :  { %v890_v0 = vpop.f32.mrf.mxu0  ;;  %v2234_v9 = vpop.f32.mrf.mxu1 }
 0x15b   :  { %1335 = vst [vmem:[#allocation2 + $0x158] sm:$0xff] %v1160_v11  ;;  %v1164_v14 = vadd.f32 %v2165_v13, %v890_v0 }
 0x15c   :  { %v892_v4 = vpop.f32.mrf.mxu0  ;;  %v2237_v12 = vpop.f32.mrf.mxu1 }
 0x15d   :  { %1336 = vst [vmem:[#allocation2 + $0x160] sm:$0xff] %v1164_v14  ;;  %v1166_v17 = vadd.f32 %v2168_v16, %v892_v4 }
 0x15e   :  { %v894_v7 = vpop.f32.mrf.mxu0  ;;  %v2240_v15 = vpop.f32.mrf.mxu1 }
 0x15f   :  { %1337 = vst [vmem:[#allocation2 + $0x168] sm:$0xff] %v1166_v17  ;;  %v1168_v20 = vadd.f32 %v2171_v19, %v894_v7 }
 0x160   :  { %v896_v10 = vpop.f32.mrf.mxu0  ;;  %v2243_v18 = vpop.f32.mrf.mxu1 }
 0x161   :  { %1338 = vst [vmem:[#allocation2 + $0x170] sm:$0xff] %v1168_v20  ;;  %v1170_v23 = vadd.f32 %v2174_v22, %v896_v10 }
 0x162   :  { %v900_v13 = vpop.f32.mrf.mxu0  ;;  %v2246_v21 = vpop.f32.mrf.mxu1 }
 0x163   :  { %1339 = vst [vmem:[#allocation2 + $0x178] sm:$0xff] %v1170_v23  ;;  %v1174_v26 = vadd.f32 %v2177_v25, %v900_v13 }
 0x164   :  { %v902_v16 = vpop.f32.mrf.mxu0  ;;  %v2249_v24 = vpop.f32.mrf.mxu1 }
 0x165   :  { %1340 = vst [vmem:[#allocation2 + $0x180] sm:$0xff] %v1174_v26  ;;  %v1176_v29 = vadd.f32 %v2180_v28, %v902_v16 }
 0x166   :  { %v904_v19 = vpop.f32.mrf.mxu0  ;;  %v2252_v27 = vpop.f32.mrf.mxu1 }
 0x167   :  { %1341 = vst [vmem:[#allocation2 + $0x188] sm:$0xff] %v1176_v29  ;;  %v1178_v32 = vadd.f32 %v2183_v31, %v904_v19 }
 0x168   :  { %v906_v22 = vpop.f32.mrf.mxu0  ;;  %v2255_v30 = vpop.f32.mrf.mxu1 }
 0x169   :  { %1342 = vst [vmem:[#allocation2 + $0x190] sm:$0xff] %v1178_v32  ;;  %v1180_v2 = vadd.f32 %v2186_v34, %v906_v22 }
 0x16a   :  { %v910_v25 = vpop.f32.mrf.mxu0  ;;  %v2258_v34 = vpop.f32.mrf.mxu1 }
 0x16b   :  { %1343 = vst [vmem:[#allocation2 + $0x198] sm:$0xff] %v1180_v2  ;;  %v1184_v37 = vadd.f32 %v2189_v36, %v910_v25 }
 0x16c   :  { %v912_v28 = vpop.f32.mrf.mxu0  ;;  %v2262_v38 = vpop.f32.mrf.mxu1 }
 0x16d   :  { %1344 = vst [vmem:[#allocation2 + $0x1a0] sm:$0xff] %v1184_v37  ;;  %v1186_v40 = vadd.f32 %v2192_v39, %v912_v28 }
 0x16e   :  { %v914_v31 = vpop.f32.mrf.mxu0  ;;  %v2266_v55 = vpop.f32.mrf.mxu1 }
 0x16f   :  { %1345 = vst [vmem:[#allocation2 + $0x1a8] sm:$0xff] %v1186_v40  ;;  %v1188_v43 = vadd.f32 %v2195_v42, %v914_v31 }
 0x170   :  { %v916_v33 = vpop.f32.mrf.mxu0  ;;  %v1247_v47 = vpop.f32.mrf.mxu1 }
 0x171   :  { %1346 = vst [vmem:[#allocation2 + $0x1b0] sm:$0xff] %v1188_v43  ;;  %v1190_v46 = vadd.f32 %v2198_v45, %v916_v33 }
 0x172   :  { %v920_v35 = vpop.f32.mrf.mxu0  ;;  %v1249_v5 = vpop.f32.mrf.mxu1 }
 0x173   :  { %1347 = vst [vmem:[#allocation2 + $0x1b8] sm:$0xff] %v1190_v46  ;;  %v1194_v36 = vadd.f32 %v2201_v48, %v920_v35 }
 0x174   :  { %v922_v49 = vpop.f32.mrf.mxu0 }
 0x175   :  { %1348 = vst [vmem:[#allocation2 + $0x1c0] sm:$0xff] %v1194_v36  ;;  %v1196_v39 = vadd.f32 %v2204_v51, %v922_v49 }
 0x176   :  { %v924_v52 = vpop.f32.mrf.mxu0 }
 0x177   :  { %1349 = vst [vmem:[#allocation2 + $0x1c8] sm:$0xff] %v1196_v39  ;;  %v1198_v42 = vadd.f32 %v2207_v54, %v924_v52 }
 0x178   :  { %v926_v41 = vpop.f32.mrf.mxu0 }
 0x179   :  { %1350 = vst [vmem:[#allocation2 + $0x1d0] sm:$0xff] %v1198_v42  ;;  %v1200_v45 = vadd.f32 %v2210_v57, %v926_v41 }
 0x17a   :  { %v930_v44 = vpop.f32.mrf.mxu0 }
 0x17b   :  { %1351 = vst [vmem:[#allocation2 + $0x1d8] sm:$0xff] %v1200_v45  ;;  %v1204_v48 = vadd.f32 %v2213_v59, %v930_v44  ;;  %v1253_v59 = vpop.f32.mrf.mxu1 }
 0x17c   :  { %v932_v58 = vpop.f32.mrf.mxu0 }
 0x17d   :  { %1352 = vst [vmem:[#allocation2 + $0x1e0] sm:$0xff] %v1204_v48  ;;  %v1206_v1 = vadd.f32 %v2216_v60, %v932_v58 }
 0x17e   :  { %v934_v51 = vpop.f32.mrf.mxu0 }
 0x17f   :  { %1353 = vst [vmem:[#allocation2 + $0x1e8] sm:$0xff] %v1206_v1  ;;  %v1208_v50 = vadd.f32 %v2219_v61, %v934_v51  ;;  %v1255_v61 = vpop.f32.mrf.mxu1 }
 0x180   :  { %v936_v54 = vpop.f32.mrf.mxu0 }
 0x181   :  { %1354 = vst [vmem:[#allocation2 + $0x1f0] sm:$0xff] %v1208_v50  ;;  %v1210_v53 = vadd.f32 %v2222_v62, %v936_v54 }
 0x182   :  { %v940_v8 = vpop.f32.mrf.mxu0 }
 0x183   :  { %1355 = vst [vmem:[#allocation2 + $0x1f8] sm:$0xff] %v1210_v53  ;;  %v1214_v57 = vadd.f32 %v2225_v63, %v940_v8  ;;  %v1257_v63 = vpop.f32.mrf.mxu1 }
 0x184   :  { %v942_v56 = vpop.f32.mrf.mxu0 }
 0x185   :  { %1356 = vst [vmem:[#allocation2 + $0x200] sm:$0xff] %v1214_v57  ;;  %v1216_v11 = vadd.f32 %v2228_v3, %v942_v56 }
 0x186   :  { %v944_v0 = vpop.f32.mrf.mxu0 }
 0x187   :  { %1357 = vst [vmem:[#allocation2 + $0x208] sm:$0xff] %v1216_v11  ;;  %v1218_v60 = vadd.f32 %v2231_v6, %v944_v0  ;;  %v1259_v6 = vpop.f32.mrf.mxu1 }
 0x188   :  { %v946_v14 = vpop.f32.mrf.mxu0 }
 0x189   :  { %1358 = vst [vmem:[#allocation2 + $0x210] sm:$0xff] %v1218_v60  ;;  %v1220_v4 = vadd.f32 %v2234_v9, %v946_v14 }
 0x18a   :  { %v950_v17 = vpop.f32.mrf.mxu0 }
 0x18b   :  { %1359 = vst [vmem:[#allocation2 + $0x218] sm:$0xff] %v1220_v4  ;;  %v1224_v62 = vadd.f32 %v2237_v12, %v950_v17  ;;  %v1263_v12 = vpop.f32.mrf.mxu1 }
 0x18c   :  { %v952_v7 = vpop.f32.mrf.mxu0 }
 0x18d   :  { %1360 = vst [vmem:[#allocation2 + $0x220] sm:$0xff] %v1224_v62  ;;  %v1226_v20 = vadd.f32 %v2240_v15, %v952_v7 }
 0x18e   :  { %v954_v10 = vpop.f32.mrf.mxu0 }
 0x18f   :  { %1361 = vst [vmem:[#allocation2 + $0x228] sm:$0xff] %v1226_v20  ;;  %v1228_v3 = vadd.f32 %v2243_v18, %v954_v10  ;;  %v1265_v18 = vpop.f32.mrf.mxu1 }
 0x190   :  { %v956_v23 = vpop.f32.mrf.mxu0 }
 0x191   :  { %1362 = vst [vmem:[#allocation2 + $0x230] sm:$0xff] %v1228_v3  ;;  %v1230_v13 = vadd.f32 %v2246_v21, %v956_v23 }
 0x192   :  { %v960_v26 = vpop.f32.mrf.mxu0 }
 0x193   :  { %1363 = vst [vmem:[#allocation2 + $0x238] sm:$0xff] %v1230_v13  ;;  %v1234_v9 = vadd.f32 %v2249_v24, %v960_v26  ;;  %v1267_v24 = vpop.f32.mrf.mxu1 }
 0x194   :  { %v962_v16 = vpop.f32.mrf.mxu0 }
 0x195   :  { %1364 = vst [vmem:[#allocation2 + $0x240] sm:$0xff] %v1234_v9  ;;  %v1236_v29 = vadd.f32 %v2252_v27, %v962_v16  ;;  %v1269_v31 = vpop.f32.mrf.mxu1 }
 0x196   :  { %v964_v19 = vpop.f32.mrf.mxu0 }
 0x197   :  { %1365 = vst [vmem:[#allocation2 + $0x248] sm:$0xff] %v1236_v29  ;;  %v1238_v15 = vadd.f32 %v2255_v30, %v964_v19  ;;  %v1273_v46 = vpop.f32.mrf.mxu1 }
 0x198   :  { %v966_v32 = vpop.f32.mrf.mxu0 }
 0x199   :  { %1366 = vst [vmem:[#allocation2 + $0x250] sm:$0xff] %v1238_v15  ;;  %v1240_v22 = vadd.f32 %v2258_v34, %v966_v32  ;;  %v1275_v39 = vpop.f32.mrf.mxu1 }
 0x19a   :  { %v970_v2 = vpop.f32.mrf.mxu0 }
 0x19b   :  { %1367 = vst [vmem:[#allocation2 + $0x258] sm:$0xff] %v1240_v22  ;;  %v1244_v21 = vadd.f32 %v2262_v38, %v970_v2  ;;  %v1277_v45 = vpop.f32.mrf.mxu1 }
 0x19c   :  { %v972_v25 = vpop.f32.mrf.mxu0 }
 0x19d   :  { %1368 = vst [vmem:[#allocation2 + $0x260] sm:$0xff] %v1244_v21  ;;  %v1246_v37 = vadd.f32 %v2266_v55, %v972_v25  ;;  %v1279_v1 = vpop.f32.mrf.mxu1 }
 0x19e   :  { %v974_v28 = vpop.f32.mrf.mxu0 }
 0x19f   :  { %1369 = vst [vmem:[#allocation2 + $0x268] sm:$0xff] %v1246_v37  ;;  %v1248_v27 = vadd.f32 %v1247_v47, %v974_v28  ;;  %v1283_v53 = vpop.f32.mrf.mxu1 }
 0x1a0   :  { %v976_v40 = vpop.f32.mrf.mxu0 }
 0x1a1   :  { %1370 = vst [vmem:[#allocation2 + $0x270] sm:$0xff] %v1248_v27  ;;  %v1250_v30 = vadd.f32 %v1249_v5, %v976_v40 }
 0x1a2   :  { %v980_v43 = vpop.f32.mrf.mxu0 }
 0x1a3   :  { %1371 = vst [vmem:[#allocation2 + $0x278] sm:$0xff] %v1250_v30  ;;  %v1254_v33 = vadd.f32 %v1253_v59, %v980_v43  ;;  %v1285_v59 = vpop.f32.mrf.mxu1 }
 0x1a4   :  { %v982_v34 = vpop.f32.mrf.mxu0 }
 0x1a5   :  { %1372 = vst [vmem:[#allocation2 + $0x280] sm:$0xff] %v1254_v33  ;;  %v1256_v35 = vadd.f32 %v1255_v61, %v982_v34  ;;  %v1287_v61 = vpop.f32.mrf.mxu1 }
 0x1a6   :  { %v984_v36 = vpop.f32.mrf.mxu0 }
 0x1a7   :  { %1373 = vst [vmem:[#allocation2 + $0x288] sm:$0xff] %v1256_v35  ;;  %v1258_v49 = vadd.f32 %v1257_v63, %v984_v36  ;;  %v1289_v63 = vpop.f32.mrf.mxu1 }
 0x1a8   :  { %v986_v38 = vpop.f32.mrf.mxu0 }
 0x1a9   :  { %1374 = vst [vmem:[#allocation2 + $0x290] sm:$0xff] %v1258_v49  ;;  %v1260_v52 = vadd.f32 %v1259_v6, %v986_v38 }
 0x1aa   :  { %v990_v42 = vpop.f32.mrf.mxu0 }
 0x1ab   :  { %1375 = vst [vmem:[#allocation2 + $0x298] sm:$0xff] %v1260_v52  ;;  %v1264_v41 = vadd.f32 %v1263_v12, %v990_v42 }
 0x1ac   :  { %v992_v55 = vpop.f32.mrf.mxu0 }
 0x1ad   :  { %1376 = vst [vmem:[#allocation2 + $0x2a0] sm:$0xff] %v1264_v41  ;;  %v1266_v44 = vadd.f32 %v1265_v18, %v992_v55 }
 0x1ae   :  { %v994_v48 = vpop.f32.mrf.mxu0 }
 0x1af   :  { %1377 = vst [vmem:[#allocation2 + $0x2a8] sm:$0xff] %v1266_v44  ;;  %v1268_v58 = vadd.f32 %v1267_v24, %v994_v48 }
 0x1b0   :  { %v996_v47 = vpop.f32.mrf.mxu0 }
 0x1b1   :  { %1378 = vst [vmem:[#allocation2 + $0x2b0] sm:$0xff] %v1268_v58  ;;  %v1270_v51 = vadd.f32 %v1269_v31, %v996_v47 }
 0x1b2   :  { %v1000_v50 = vpop.f32.mrf.mxu0 }
 0x1b3   :  { %1379 = vst [vmem:[#allocation2 + $0x2b8] sm:$0xff] %v1270_v51  ;;  %v1274_v54 = vadd.f32 %v1273_v46, %v1000_v50 }
 0x1b4   :  { %v1002_v5 = vpop.f32.mrf.mxu0 }
 0x1b5   :  { %1380 = vst [vmem:[#allocation2 + $0x2c0] sm:$0xff] %v1274_v54  ;;  %v1276_v8 = vadd.f32 %v1275_v39, %v1002_v5 }
 0x1b6   :  { %v1004_v57 = vpop.f32.mrf.mxu0 }
 0x1b7   :  { %1381 = vst [vmem:[#allocation2 + $0x2c8] sm:$0xff] %v1276_v8  ;;  %v1278_v56 = vadd.f32 %v1277_v45, %v1004_v57 }
 0x1b8   :  { %v1006_v11 = vpop.f32.mrf.mxu0 }
 0x1b9   :  { %1382 = vst [vmem:[#allocation2 + $0x2d0] sm:$0xff] %v1278_v56  ;;  %v1280_v0 = vadd.f32 %v1279_v1, %v1006_v11 }
 0x1ba   :  { %v1010_v60 = vpop.f32.mrf.mxu0 }
 0x1bb   :  { %1383 = vst [vmem:[#allocation2 + $0x2d8] sm:$0xff] %v1280_v0  ;;  %v1284_v14 = vadd.f32 %v1283_v53, %v1010_v60 }
 0x1bc   :  { %v1012_v4 = vpop.f32.mrf.mxu0 }
 0x1bd   :  { %1384 = vst [vmem:[#allocation2 + $0x2e0] sm:$0xff] %v1284_v14  ;;  %v1286_v17 = vadd.f32 %v1285_v59, %v1012_v4 }
 0x1be   :  { %v1014_v62 = vpop.f32.mrf.mxu0 }
 0x1bf   :  { %1385 = vst [vmem:[#allocation2 + $0x2e8] sm:$0xff] %v1286_v17  ;;  %v1288_v7 = vadd.f32 %v1287_v61, %v1014_v62 }
 0x1c0   :  { %v1016_v20 = vpop.f32.mrf.mxu0 }
 0x1c1   :  { %1386 = vst [vmem:[#allocation2 + $0x2f0] sm:$0xff] %v1288_v7  ;;  %v1290_v10 = vadd.f32 %v1289_v63, %v1016_v20 }
 0x1c3   :  { %1387 = vst [vmem:[#allocation2 + $0x2f8] sm:$0xff] %v1290_v10 }
 0x1c4   :  { %1696 = shalt.err (!%p1693_p4)
}
 0x1c5   :  { %s1709_s22 = smov 256   ;;  %s1710_s23 = smov 16  }
 0x1c6   :  { %1399 = dma.vmem_to_hbm [thread:$0]  %s1394_s20, 12288, %s2292_s2, [#allocation3], %s1709_s22, %s1709_s22, %s1710_s23  }
 0x1c7   :  { %1705 = dma.done.wait [#allocation3], 12288  }
 0x1c8   :  { %1706 = vsyncadd [#allocation3], 4294955008 }
 0x1c9   :  { %1403 = vsyncpa [#allocation3], 1 }

</bundles_post_ra>
